<compile_context>
chip_gen: v5e
topology: v5e:2x2
jax: 0.10.0
libtpu: 0.0.40
codegen_flags: <defaults>
</compile_context>

<pallas_src>
import functools
import math

import jax
import jax.numpy as jnp
from jax.experimental import pallas as pl
from jax.experimental.pallas import tpu as pltpu


def _evonorm_s0_kernel(x_ref, vh_ref, gamma_ref, beta_ref, o_ref, *, rep, eps, n):
    # x_ref / o_ref: (TR, L).  vh/gamma/beta: (PR, L) f32 with TR = rep * PR.
    x2 = x_ref[...].astype(jnp.float32)                                   # (TR, L)

    # Per-row (= per (sample, group)) unbiased two-pass variance.
    mean = jnp.sum(x2, axis=-1, keepdims=True) * jnp.float32(1.0 / n)     # (TR, 1)
    d = x2 - mean
    var = jnp.sum(d * d, axis=-1, keepdims=True) * jnp.float32(1.0 / (n - 1))
    # rsqrt on the EUP; fold the 0.5 of the tanh-form sigmoid into this cheap
    # per-row scale instead of a full-width VALU op.
    scale = jax.lax.rsqrt(var + jnp.float32(eps)) * jnp.float32(0.5)      # (TR, 1)

    pr = vh_ref.shape[0]
    # Sublane-split view (pr is a multiple of the sublane count on the dense
    # path, so this reshape preserves (8,128) tiling -> no relayout copy).
    x3 = x2.reshape(rep, pr, n)
    scale3 = scale.reshape(rep, pr, 1)

    # x*sigmoid(v*x) == 0.5*(x*tanh(0.5*v*x) + x); 0.5*v folded into vh.
    t = jnp.tanh(x3 * vh_ref[...])                                        # EUP
    num = x3 * t + x3
    out = num * (scale3 * gamma_ref[...]) + beta_ref[...]

    o_ref[...] = out.reshape(x2.shape).astype(o_ref.dtype)


def _pick_row_tile(num_rows, groups, row_period, row_bytes, target_bytes=2 << 20):
    """Row tile: multiple of `groups` (same param rows for every block), divides
    num_rows, prefers sublane-dense multiples of row_period, ~target_bytes big,
    and keeps >= 2 grid steps when that doesn't shrink blocks below ~256 KiB."""
    divs = [t for t in range(groups, num_rows + 1, groups) if num_rows % t == 0]
    dense = [t for t in divs if t % row_period == 0]
    cands = dense if dense else divs
    fitting = [t for t in cands if t * row_bytes <= target_bytes]
    tr = max(fitting) if fitting else min(cands)
    if num_rows // tr < 2:
        alts = [t for t in cands if num_rows // t >= 2 and t * row_bytes >= (256 << 10)]
        if alts:
            tr = max(alts)
    return tr


def evonorm1d_s0(x, v, gamma, beta, *, groups, eps=1e-5):
    """x: (N, C, H); v/gamma/beta: (1, C, 1) (PyTorch parameter convention)."""
    N, C, H = x.shape
    assert C % groups == 0, "channels must be divisible by groups"
    cg = C // groups
    L = cg * H
    assert L > 1, "unbiased variance needs >= 2 elements per group"

    # Flatten so each (sample, group) slab is one lane-dense row: (N*G, L).
    R = N * groups
    xf = x.reshape(R, L)

    itemsize = jnp.dtype(x.dtype).itemsize
    sublane = max(8, 32 // itemsize)            # 8 rows f32, 16 bf16, 32 int8
    row_period = math.lcm(sublane, groups)      # param repeat period along rows
    row_bytes = L * itemsize

    tr = _pick_row_tile(R, groups, row_period, row_bytes)
    pr = row_period if tr % row_period == 0 else tr   # param block rows
    rep = tr // pr
    grid = (R // tr,)

    # Per-channel params expanded to the flattened (pr, L) row layout (tiny,
    # computed once); the 0.5 of the tanh-form sigmoid is folded into v here.
    def expand(p):
        q = jnp.broadcast_to(p.reshape(C, 1).astype(jnp.float32), (C, H))
        return jnp.tile(q.reshape(groups, L), (pr // groups, 1))

    vh = expand(v) * jnp.float32(0.5)
    ge = expand(gamma)
    be = expand(beta)

    # VMEM budget: double-buffered in/out blocks + params, capped so even
    # v7x's 64 MiB physical VMEM is never at risk.
    in_bytes = tr * row_bytes
    par_bytes = 3 * pr * L * 4
    vmem_needed = 4 * in_bytes + 2 * par_bytes + (1 << 20)
    # TODO(synk): for shapes where a single group's row exceeds this budget,
    # add an L-chunk ("arbitrary") grid axis with streamed sum/sum-of-squares
    # accumulators finalized via pl.when on the last chunk.
    assert vmem_needed <= (24 << 20), "group row too large for single-block path"
    vmem_limit = int(min(max(vmem_needed, 8 << 20), 24 << 20))

    kernel = functools.partial(_evonorm_s0_kernel, rep=rep, eps=eps, n=L)

    out = pl.pallas_call(
        kernel,
        out_shape=jax.ShapeDtypeStruct((R, L), x.dtype),
        grid_spec=pltpu.PrefetchScalarGridSpec(
            num_scalar_prefetch=0,
            grid=grid,
            in_specs=[
                pl.BlockSpec((tr, L), lambda i: (i, 0)),   # x
                pl.BlockSpec((pr, L), lambda i: (0, 0)),   # 0.5*v  (constant)
                pl.BlockSpec((pr, L), lambda i: (0, 0)),   # gamma  (constant)
                pl.BlockSpec((pr, L), lambda i: (0, 0)),   # beta   (constant)
            ],
            out_specs=pl.BlockSpec((tr, L), lambda i: (i, 0)),
        ),
        compiler_params=pltpu.CompilerParams(
            dimension_semantics=("parallel",),
            vmem_limit_bytes=vmem_limit),
    )(xf, vh, ge, be)

    return out.reshape(N, C, H)


def _reference(x, v, gamma, beta, *, groups, eps=1e-5):
    # Pure-JAX reference mirroring the PyTorch forward (S0, non_linear, not efficient).
    N, C, H = x.shape
    xr = x.reshape(N, groups, C // groups, H)
    var = jnp.var(xr, axis=(2, 3), keepdims=True, ddof=1)            # unbiased
    std = jnp.sqrt(var + eps)
    std = jnp.broadcast_to(std, xr.shape).reshape(N, C, H)
    num = x * jax.nn.sigmoid(v * x)
    return num / std * gamma + beta


if __name__ == "__main__":
    N, C, H = 2, 32, 64
    groups = 4
    eps = 1e-5

    key = jax.random.PRNGKey(0)
    kx, kg, kb, kv = jax.random.split(key, 4)
    x = jax.random.normal(kx, (N, C, H), dtype=jnp.float32)

    # Deterministic, non-trivial params (exercise the per-channel layout path).
    gamma = 1.0 + 0.1 * jax.random.normal(kg, (1, C, 1), dtype=jnp.float32)
    beta = 0.1 * jax.random.normal(kb, (1, C, 1), dtype=jnp.float32)
    v = 1.0 + 0.1 * jax.random.normal(kv, (1, C, 1), dtype=jnp.float32)

    out = evonorm1d_s0(x, v, gamma, beta, groups=groups, eps=eps)
    out = jax.block_until_ready(out)

    ref = _reference(x, v, gamma, beta, groups=groups, eps=eps)
    assert jnp.allclose(out, ref, rtol=1e-5, atol=1e-5), "mismatch vs reference"

    print("KERNEL_OK")
</pallas_src>

<mosaic_0001>
module attributes {stable_mosaic.version = 11 : i64} {
  func.func @_evonorm_s0_kernel(%arg0: i32, %arg1: memref<8x512xf32, #tpu.memory_space<vmem>>, %arg2: memref<8x512xf32, #tpu.memory_space<vmem>>, %arg3: memref<8x512xf32, #tpu.memory_space<vmem>>, %arg4: memref<8x512xf32, #tpu.memory_space<vmem>>, %arg5: memref<8x512xf32, #tpu.memory_space<vmem>>) attributes {dimension_semantics = [#tpu.dimension_semantics<parallel>], iteration_bounds = array<i64: 1>, scalar_prefetch = 0 : i64, scratch_operands = 0 : i64, tpu.core_type = #tpu.core_type<tc>, window_params = [{transform_indices = @transform_0, window_bounds = array<i64: 8, 512>}, {pipeline_mode = #tpu.pipeline_mode<synchronous>, transform_indices = @transform_1, window_bounds = array<i64: 8, 512>}, {pipeline_mode = #tpu.pipeline_mode<synchronous>, transform_indices = @transform_2, window_bounds = array<i64: 8, 512>}, {pipeline_mode = #tpu.pipeline_mode<synchronous>, transform_indices = @transform_3, window_bounds = array<i64: 8, 512>}, {transform_indices = @transform_4, window_bounds = array<i64: 8, 512>}]} {
    %c0 = arith.constant 0 : index
    %c0_0 = arith.constant 0 : index
    %0 = vector.load %arg1[%c0, %c0_0] : memref<8x512xf32, #tpu.memory_space<vmem>>, vector<8x512xf32>
    %cst = arith.constant dense<0.000000e+00> : vector<8xf32>
    %1 = vector.multi_reduction <add>, %0, %cst [1] : vector<8x512xf32> to vector<8xf32>
    %2 = vector.shape_cast %1 : vector<8xf32> to vector<8x1xf32>
    %cst_1 = arith.constant 0.001953125 : f32
    %3 = vector.broadcast %cst_1 : f32 to vector<8x1xf32>
    %4 = arith.mulf %2, %3 : vector<8x1xf32>
    %5 = vector.broadcast %4 : vector<8x1xf32> to vector<8x512xf32>
    %6 = arith.subf %0, %5 : vector<8x512xf32>
    %7 = arith.mulf %6, %6 : vector<8x512xf32>
    %cst_2 = arith.constant dense<0.000000e+00> : vector<8xf32>
    %8 = vector.multi_reduction <add>, %7, %cst_2 [1] : vector<8x512xf32> to vector<8xf32>
    %9 = vector.shape_cast %8 : vector<8xf32> to vector<8x1xf32>
    %cst_3 = arith.constant 0.00195694715 : f32
    %10 = vector.broadcast %cst_3 : f32 to vector<8x1xf32>
    %11 = arith.mulf %9, %10 : vector<8x1xf32>
    %cst_4 = arith.constant 9.99999974E-6 : f32
    %12 = vector.broadcast %cst_4 : f32 to vector<8x1xf32>
    %13 = arith.addf %11, %12 : vector<8x1xf32>
    %14 = math.rsqrt %13 : vector<8x1xf32>
    %cst_5 = arith.constant 5.000000e-01 : f32
    %15 = vector.broadcast %cst_5 : f32 to vector<8x1xf32>
    %16 = arith.mulf %14, %15 : vector<8x1xf32>
    %17 = vector.shape_cast %0 : vector<8x512xf32> to vector<1x8x512xf32>
    %18 = vector.shape_cast %16 : vector<8x1xf32> to vector<1x8x1xf32>
    %c0_6 = arith.constant 0 : index
    %c0_7 = arith.constant 0 : index
    %19 = vector.load %arg2[%c0_6, %c0_7] : memref<8x512xf32, #tpu.memory_space<vmem>>, vector<8x512xf32>
    %20 = vector.shape_cast %19 : vector<8x512xf32> to vector<1x8x512xf32>
    %21 = arith.mulf %17, %20 : vector<1x8x512xf32>
    %22 = math.tanh %21 : vector<1x8x512xf32>
    %23 = arith.mulf %17, %22 : vector<1x8x512xf32>
    %24 = arith.addf %23, %17 : vector<1x8x512xf32>
    %c0_8 = arith.constant 0 : index
    %c0_9 = arith.constant 0 : index
    %25 = vector.load %arg3[%c0_8, %c0_9] : memref<8x512xf32, #tpu.memory_space<vmem>>, vector<8x512xf32>
    %26 = vector.shape_cast %25 : vector<8x512xf32> to vector<1x8x512xf32>
    %27 = vector.broadcast %18 : vector<1x8x1xf32> to vector<1x8x512xf32>
    %28 = arith.mulf %27, %26 : vector<1x8x512xf32>
    %29 = arith.mulf %24, %28 : vector<1x8x512xf32>
    %c0_10 = arith.constant 0 : index
    %c0_11 = arith.constant 0 : index
    %30 = vector.load %arg4[%c0_10, %c0_11] : memref<8x512xf32, #tpu.memory_space<vmem>>, vector<8x512xf32>
    %31 = vector.shape_cast %30 : vector<8x512xf32> to vector<1x8x512xf32>
    %32 = arith.addf %29, %31 : vector<1x8x512xf32>
    %33 = vector.shape_cast %32 : vector<1x8x512xf32> to vector<8x512xf32>
    %c0_12 = arith.constant 0 : index
    %c0_13 = arith.constant 0 : index
    %34 = vector.load %arg5[%c0_12, %c0_13] : memref<8x512xf32, #tpu.memory_space<vmem>>, vector<8x512xf32>
    tpu.vector_store %arg5[%c0_12, %c0_13], %33 {strides = array<i32>} : memref<8x512xf32, #tpu.memory_space<vmem>>, vector<8x512xf32>,
    return
  }
  func.func @transform_0(%arg0: i32) -> (i32, i32) {
    %c0_i32 = arith.constant 0 : i32
    %c0_i32_0 = arith.constant 0 : i32
    return %arg0, %c0_i32 : i32, i32
  }
  func.func @transform_1(%arg0: i32) -> (i32, i32) {
    %c0_i32 = arith.constant 0 : i32
    %c0_i32_0 = arith.constant 0 : i32
    %c0_i32_1 = arith.constant 0 : i32
    return %c0_i32, %c0_i32_0 : i32, i32
  }
  func.func @transform_2(%arg0: i32) -> (i32, i32) {
    %c0_i32 = arith.constant 0 : i32
    %c0_i32_0 = arith.constant 0 : i32
    %c0_i32_1 = arith.constant 0 : i32
    return %c0_i32, %c0_i32_0 : i32, i32
  }
  func.func @transform_3(%arg0: i32) -> (i32, i32) {
    %c0_i32 = arith.constant 0 : i32
    %c0_i32_0 = arith.constant 0 : i32
    %c0_i32_1 = arith.constant 0 : i32
    return %c0_i32, %c0_i32_0 : i32, i32
  }
  func.func @transform_4(%arg0: i32) -> (i32, i32) {
    %c0_i32 = arith.constant 0 : i32
    %c0_i32_0 = arith.constant 0 : i32
    return %arg0, %c0_i32 : i32, i32
  }
}

</mosaic_0001>

<bundles_post_ra>
// kernel: tpu_custom_call.1
= control target key start
LH: loop header
LB: loop body
LE: loop exit
PB: predicated region body
PF: predicated region fallthrough
CT: control target
= control target key end

     0   :  { %9 = vsyncpa [#allocation3], 0  ;;  %s360_s0 = inlined_call_operand.hbm [shape: f32[8,512], index: 0, kind: input, shape index: {}]   ;;  %s361_s1 = inlined_call_operand.hbm [shape: f32[8,512], index: 1, kind: input, shape index: {}]   ;;  %s362_s2 = inlined_call_operand.hbm [shape: f32[8,512], index: 2, kind: input, shape index: {}]   ;;  %s363_s3 = inlined_call_operand.hbm [shape: f32[8,512], index: 3, kind: input, shape index: {}]   ;;  %s364_s4 = inlined_call_operand.hbm [shape: f32[8,512], index: 4, kind: output, shape index: {}]  }
   0x1   :  { %10 = vsyncpa [#allocation6], 0 }
   0x2   :  { %11 = vsyncpa [#allocation9], 0  ;;  %s29_s17 = sshll.u32 %s361_s1, 4  ;;  %s30_s17 = int_to_ptr.hbm [resolvable:$true] %s29_s17 }
   0x3   :  { %12 = vsyncpa [#allocation4], 0  ;;  %s315_s18 = smov [#allocation5]   ;;  %s18_s22 = sshll.u32 %s360_s0, 4  ;;  %s19_s22 = int_to_ptr.hbm [resolvable:$true] %s18_s22 }
   0x4   :  { %s31_s19 = sshll.u32 %s315_s18, 4  ;;  %s316_s23 = smov [#allocation2]   ;;  %s32_s19 = int_to_ptr.vmem [resolvable:$true] %s31_s19 }
   0x5   :  { %34 = dma.hbm_to_vmem [thread:$0]  %s30_s17, 512, %s32_s19, [#allocation6]  }
   0x6   :  { %s20_s24 = sshll.u32 %s316_s23, 4  ;;  %s40_s27 = sshll.u32 %s362_s2, 4  ;;  %s21_s24 = int_to_ptr.vmem [resolvable:$true] %s20_s24  ;;  %s41_s27 = int_to_ptr.hbm [resolvable:$true] %s40_s27 }
   0x7   :  { %23 = dma.hbm_to_vmem [thread:$0]  %s19_s22, 512, %s21_s24, [#allocation3]  }
   0x8   :  { %s51_s29 = sshll.u32 %s363_s3, 4  ;;  %s317_s30 = smov [#allocation7]   ;;  %s52_s29 = int_to_ptr.hbm [resolvable:$true] %s51_s29 }
   0x9   :  { %s42_s5 = sshll.u32 %s317_s30, 4  ;;  %s318_s0 = smov [#allocation8]   ;;  %s43_s5 = int_to_ptr.vmem [resolvable:$true] %s42_s5 }
   0xa   :  { %45 = dma.hbm_to_vmem [thread:$0]  %s41_s27, 512, %s43_s5, [#allocation6]  }
   0xb   :  { %s53_s6 = sshll.u32 %s318_s0, 4  ;;  %s54_s6 = int_to_ptr.vmem [resolvable:$true] %s53_s6 }
   0xc   :  { %56 = dma.hbm_to_vmem [thread:$0]  %s52_s29, 512, %s54_s6, [#allocation9]  }
   0xd   :  { %307 = dma.done.wait [#allocation3], 512  }
   0xe   :  { %308 = vsyncadd [#allocation3], 4294966784 }
   0xf   :  { %309 = dma.done.wait [#allocation6], 1024  }
  0x10   :  { %310 = vsyncadd [#allocation6], 4294966272 }
  0x11   :  { %311 = dma.done.wait [#allocation9], 512  }
  0x12   :  { %312 = vsyncadd [#allocation9], 4294966784  ;;  %v73_v0 = vld [vmem:[#allocation2] sm:$0xff]  ;;  %v74_v1 = vld [vmem:[#allocation2 + $0x8] sm:$0xff]  ;;  %s319_s2 = smov [#allocation10]   ;;  %s160_s9 = sshll.u32 %s364_s4, 4  ;;  %s161_s9 = int_to_ptr.hbm [resolvable:$true] %s160_s9 }
  0x13   :  { %v75_v2 = vld [vmem:[#allocation2 + $0x10] sm:$0xff]  ;;  %v77_v3 = vadd.f32 %v74_v1, %v73_v0  ;;  %v76_v4 = vld [vmem:[#allocation2 + $0x18] sm:$0xff]  ;;  %v109_v20 = vld [vmem:[#allocation5] sm:$0xff]  ;;  %s158_s3 = sshll.u32 %s319_s2, 4  ;;  %s159_s3 = int_to_ptr.vmem [resolvable:$true] %s158_s3 }
  0x14   :  { %v110_v22 = vld [vmem:[#allocation5 + $0x8] sm:$0xff]  ;;  %v111_v24 = vld [vmem:[#allocation5 + $0x10] sm:$0xff]  ;;  %v112_v25 = vld [vmem:[#allocation5 + $0x18] sm:$0xff]  ;;  %v113_v26 = vmul.f32 %v109_v20, %v73_v0 }
  0x15   :  { %v78_v5 = vadd.f32 %v77_v3, %v75_v2  ;;  %v114_v28 = vmul.f32 %v110_v22, %v74_v1  ;;  %v115_v29 = vmul.f32 %v111_v24, %v75_v2  ;;  %v116_v30 = vmul.f32 %v112_v25, %v76_v4  ;;  %v129_v45 = vld [vmem:[#allocation7] sm:$0xff]  ;;  %v130_v47 = vld [vmem:[#allocation7 + $0x8] sm:$0xff]  ;;  %v131_v48 = vld [vmem:[#allocation7 + $0x10] sm:$0xff] }
  0x16   :  { %v132_v49 = vld [vmem:[#allocation7 + $0x18] sm:$0xff]  ;;  %v141_v59 = vld [vmem:[#allocation8] sm:$0xff]  ;;  %v142_v60 = vld [vmem:[#allocation8 + $0x8] sm:$0xff] }
  0x17   :  { %v79_v6 = vadd.f32 %v78_v5, %v76_v4  ;;  %v143_v61 = vld [vmem:[#allocation8 + $0x10] sm:$0xff] }
  0x19   :  { %80 = vadd.xlane.f32.xlu0 %v79_v6 }
  0x8c   :  { %v81_v7 = vpop.xlane.xlu0 %80 }
  0x8d   :  { %v82_v8 = vmul.f32 0.001953125, %v81_v7 }
  0x8f   :  { %v83_v9 = vsub.f32 %v73_v0, %v82_v8  ;;  %v84_v10 = vsub.f32 %v74_v1, %v82_v8  ;;  %v85_v11 = vsub.f32 %v75_v2, %v82_v8  ;;  %v86_v12 = vsub.f32 %v76_v4, %v82_v8 }
  0x91   :  { %v87_v13 = vmul.f32 %v83_v9, %v83_v9  ;;  %v88_v14 = vmul.f32 %v84_v10, %v84_v10  ;;  %v89_v15 = vmul.f32 %v85_v11, %v85_v11  ;;  %v90_v17 = vmul.f32 %v86_v12, %v86_v12 }
  0x93   :  { %v91_v16 = vadd.f32 %v88_v14, %v87_v13 }
  0x95   :  { %v92_v18 = vadd.f32 %v91_v16, %v89_v15 }
  0x97   :  { %v93_v19 = vadd.f32 %v92_v18, %v90_v17 }
  0x99   :  { %94 = vadd.xlane.f32.xlu0 %v93_v19 }
 0x10c   :  { %v95_v21 = vpop.xlane.xlu0 %94 }
 0x10d   :  { %v96_v23 = vmul.f32 0.0019569471, %v95_v21 }
 0x10f   :  { %v97_v27 = vadd.f32 1e-05, %v96_v23 }
 0x111   :  { %177 = vrsqrt.f32 %v97_v27  ;;  %vm104_vm1 = vweird.f32 %v97_v27 }
 0x112   :  { %179 = vtanh.f32 %v113_v26 }
 0x113   :  { %181 = vtanh.f32 %v114_v28 }
 0x114   :  { %183 = vtanh.f32 %v115_v29 }
 0x115   :  { %185 = vtanh.f32 %v116_v30 }
 0x117   :  { %v178_v31 = vpop.eup %177 }
 0x118   :  { %v99_v32 = vmul.f32 %v178_v31, %v97_v27  ;;  %v180_v33 = vpop.eup %179  ;;  %vm105_vm0 = vweird.f32 %v178_v31 }
 0x119   :  { %v182_v34 = vpop.eup %181  ;;  %v121_v39 = vmul.f32 %v180_v33, %v73_v0  ;;  %vm106_vm2 = vmor %vm104_vm1, %vm105_vm0 }
 0x11a   :  { %v100_v35 = vmul.f32 %v178_v31, %v99_v32  ;;  %v184_v36 = vpop.eup %183  ;;  %v122_v41 = vmul.f32 %v182_v34, %v74_v1 }
 0x11b   :  { %v186_v37 = vpop.eup %185  ;;  %v123_v42 = vmul.f32 %v184_v36, %v75_v2  ;;  %v125_v46 = vadd.f32 %v121_v39, %v73_v0  ;;  %v144_v0 = vld [vmem:[#allocation8 + $0x18] sm:$0xff] }
 0x11c   :  { %v101_v38 = vmul.f32 0.5, %v100_v35  ;;  %v124_v43 = vmul.f32 %v186_v37, %v76_v4  ;;  %v126_v51 = vadd.f32 %v122_v41, %v74_v1 }
 0x11d   :  { %v127_v52 = vadd.f32 %v123_v42, %v75_v2 }
 0x11e   :  { %v102_v40 = vsub.f32 1.5, %v101_v38  ;;  %v128_v53 = vadd.f32 %v124_v43, %v76_v4 }
 0x120   :  { %v103_v44 = vmul.f32 %v178_v31, %v102_v40 }
 0x122   :  { %v107_v50 = vsel %vm106_vm2, %v178_v31, %v103_v44 }
 0x123   :  { %v108_v54 = vmul.f32 0.5, %v107_v50 }
 0x125   :  { %v133_v55 = vmul.f32 %v129_v45, %v108_v54  ;;  %v134_v56 = vmul.f32 %v130_v47, %v108_v54  ;;  %v135_v57 = vmul.f32 %v131_v48, %v108_v54  ;;  %v136_v58 = vmul.f32 %v132_v49, %v108_v54 }
 0x127   :  { %v137_v62 = vmul.f32 %v133_v55, %v125_v46  ;;  %v138_v63 = vmul.f32 %v134_v56, %v126_v51  ;;  %v139_v3 = vmul.f32 %v135_v57, %v127_v52  ;;  %v140_v5 = vmul.f32 %v136_v58, %v128_v53 }
 0x129   :  { %v145_v6 = vadd.f32 %v141_v59, %v137_v62  ;;  %v146_v7 = vadd.f32 %v142_v60, %v138_v63  ;;  %v147_v8 = vadd.f32 %v143_v61, %v139_v3  ;;  %v148_v1 = vadd.f32 %v144_v0, %v140_v5 }
 0x12b   :  { %149 = vst [vmem:[#allocation10] sm:$0xff] %v145_v6 }
 0x12c   :  { %150 = vst [vmem:[#allocation10 + $0x8] sm:$0xff] %v146_v7 }
 0x12d   :  { %151 = vst [vmem:[#allocation10 + $0x10] sm:$0xff] %v147_v8 }
 0x12e   :  { %152 = vst [vmem:[#allocation10 + $0x18] sm:$0xff] %v148_v1 }
 0x12f   :  { %163 = dma.vmem_to_hbm [thread:$0]  %s159_s3, 512, %s161_s9, [#allocation4]  }
 0x130   :  { %313 = dma.done.wait [#allocation4], 512  }
 0x131   :  { %314 = vsyncadd [#allocation4], 4294966784 }
 0x132   :  { %168 = vsyncpa [#allocation3], 1 }
 0x133   :  { %169 = vsyncpa [#allocation6], 1 }
 0x134   :  { %170 = vsyncpa [#allocation9], 1 }
 0x135   :  { %171 = vsyncpa [#allocation4], 1 }

</bundles_post_ra>
